<compile_context>
chip_gen: v7x
topology: tpu7x:2x2x1
jax: 0.10.0
libtpu: 0.0.40
codegen_flags: <defaults>
</compile_context>

<pallas_src>
import jax
import jax.numpy as jnp
from jax import lax
from jax.experimental import pallas as pl
from jax.experimental.pallas import tpu as pltpu

_ALPHA = 0.2  # LeakyReLU negative slope (both activations in PredHead)


def _leaky(v):
    return jnp.where(v > 0, v, _ALPHA * v)


def _make_kernel(H, W):
    """Builds the fused PredHead kernel for a static spatial size (H, W)."""
    HW = H * W
    PAD = W + 1  # covers all tap offsets in [-(W+1), +(W+1)]

    def kernel(x_ref, w1_ref, b1_ref, w2_ref, b2_ref, o_ref):
        # x_ref : (Cin_p, HW)     flattened input, lane-dense
        # w1_ref: (Chid, 9*Cin_p) im2col conv1 weights (tap-major columns)
        # b1_ref: (Chid, 1)
        # w2_ref: (Cout, 9*Chid)  im2col conv2 weights
        # b2_ref: (Cout, 1)
        # o_ref : (Cout, HW)      lane-dense output

        # Column index of every output pixel: masks for the kx = 0 / 2 taps
        # (where the flat lane shift would wrap into the neighbouring row).
        col = lax.broadcasted_iota(jnp.int32, (1, HW), 1) % W
        mask_l = col >= 1          # source column x-1 is valid
        mask_r = col <= W - 2      # source column x+1 is valid

        def im2col(flat):
            """(C, HW) -> (9*C, HW) im2col matrix, tap-major row blocks."""
            C = flat.shape[0]
            zpad = jnp.zeros((C, PAD), jnp.float32)
            # SAME padding on the flat lane axis; row over/underflow of a tap
            # always lands in these zero slabs (or is column-masked below).
            padded = jnp.concatenate([zpad, flat, zpad], axis=1)  # (C, HW+2*PAD)
            slabs = []
            for ky in range(3):
                for kx in range(3):
                    off = (ky - 1) * W + (kx - 1)
                    s = padded[:, PAD + off:PAD + off + HW]       # lane shift only
                    if kx == 0:
                        s = jnp.where(mask_l, s, 0.0)
                    elif kx == 2:
                        s = jnp.where(mask_r, s, 0.0)
                    slabs.append(s)
            return jnp.concatenate(slabs, axis=0)                 # (9*C, HW)

        # ---- conv1 (Cin -> Chid) + bias + LeakyReLU : one MXU matmul --------
        xcol = im2col(x_ref[...])                                  # (9*Cin_p, HW)
        h = jnp.dot(w1_ref[...], xcol, preferred_element_type=jnp.float32)
        h = _leaky(h + b1_ref[...])                                # (Chid, HW)

        # ---- conv2 (Chid -> Cout) + bias + LeakyReLU : one MXU matmul -------
        hcol = im2col(h)                                           # (9*Chid, HW)
        y = jnp.dot(w2_ref[...], hcol, preferred_element_type=jnp.float32)
        o_ref[...] = _leaky(y + b2_ref[...])                       # (Cout, HW)

    return kernel


@jax.jit
def pred_head_forward(x, w1, b1, w2, b2):
    """PredHead.forward.  x: (N, Cin, H, W) f32; w*: OIHW; b*: (C,)."""
    N, Cin, H, W = x.shape
    Chid = w1.shape[0]
    Cout = w2.shape[0]
    HW = H * W

    # --- wrapper-side layout glue (cheap XLA ops on tiny tensors) ------------
    x_flat = x.reshape(N, Cin, HW)                         # contiguous, free
    pad_c = (-Cin) % 8                                     # 8-align channel rows
    if pad_c:
        x_flat = jnp.pad(x_flat, ((0, 0), (0, pad_c), (0, 0)))
        w1p = jnp.pad(w1, ((0, 0), (0, pad_c), (0, 0), (0, 0)))
    else:
        w1p = w1
    Cin_p = Cin + pad_c

    # im2col weights: W_col[o, (ky*3+kx)*C + ci] = w[o, ci, ky, kx]
    w1c = jnp.transpose(w1p, (0, 2, 3, 1)).reshape(Chid, 9 * Cin_p)
    w2c = jnp.transpose(w2, (0, 2, 3, 1)).reshape(Cout, 9 * Chid)
    b1r = b1.reshape(Chid, 1)
    b2r = b2.reshape(Cout, 1)

    out = pl.pallas_call(
        _make_kernel(H, W),
        out_shape=jax.ShapeDtypeStruct((N, Cout, HW), jnp.float32),
        grid_spec=pltpu.PrefetchScalarGridSpec(
            num_scalar_prefetch=0,
            grid=(N,),
            in_specs=[
                pl.BlockSpec((None, Cin_p, HW), lambda n: (n, 0, 0)),
                pl.BlockSpec((Chid, 9 * Cin_p), lambda n: (0, 0)),
                pl.BlockSpec((Chid, 1), lambda n: (0, 0)),
                pl.BlockSpec((Cout, 9 * Chid), lambda n: (0, 0)),
                pl.BlockSpec((Cout, 1), lambda n: (0, 0)),
            ],
            out_specs=pl.BlockSpec((None, Cout, HW), lambda n: (n, 0, 0)),
        ),
        compiler_params=pltpu.CompilerParams(
            dimension_semantics=("parallel",)),
    )(x_flat, w1c, b1r, w2c, b2r)

    # (N, Cout, H*W) is contiguous -> free reshape back to NCHW.
    return out.reshape(N, Cout, H, W)


# --- pure-JAX reference for the correctness check -----------------------------
def pred_head_reference(x, w1, b1, w2, b2):
    dn = ("NCHW", "OIHW", "NCHW")
    h = lax.conv_general_dilated(x, w1, (1, 1), "SAME", dimension_numbers=dn)
    h = _leaky(h + b1[None, :, None, None])
    y = lax.conv_general_dilated(h, w2, (1, 1), "SAME", dimension_numbers=dn)
    return _leaky(y + b2[None, :, None, None])


if __name__ == "__main__":
    # Small shapes consistent with the module (input_dim -> hidden_dim -> 3).
    N, Cin, H, W = 2, 4, 16, 16
    Chid, Cout = 8, 3

    key = jax.random.PRNGKey(0)
    k1, k2, k3, k4, k5 = jax.random.split(key, 5)
    x = jax.random.normal(k1, (N, Cin, H, W), jnp.float32)
    w1 = jax.random.normal(k2, (Chid, Cin, 3, 3), jnp.float32) * 0.1
    b1 = jax.random.normal(k3, (Chid,), jnp.float32) * 0.1
    w2 = jax.random.normal(k4, (Cout, Chid, 3, 3), jnp.float32) * 0.1
    b2 = jax.random.normal(k5, (Cout,), jnp.float32) * 0.1

    y = jax.block_until_ready(pred_head_forward(x, w1, b1, w2, b2))

    y_ref = pred_head_reference(x, w1, b1, w2, b2)
    assert y.shape == (N, Cout, H, W), y.shape
    max_err = float(jnp.max(jnp.abs(y - y_ref)))
    assert jnp.allclose(y, y_ref, atol=1e-3, rtol=1e-3), max_err

    print("KERNEL_OK")
</pallas_src>

<mosaic_0001>
module attributes {stable_mosaic.version = 11 : i64} {
  func.func @kernel(%arg0: i32, %arg1: memref<1x8x256xf32, #tpu.memory_space<vmem>>, %arg2: memref<8x72xf32, #tpu.memory_space<vmem>>, %arg3: memref<8x1xf32, #tpu.memory_space<vmem>>, %arg4: memref<3x72xf32, #tpu.memory_space<vmem>>, %arg5: memref<3x1xf32, #tpu.memory_space<vmem>>, %arg6: memref<1x3x256xf32, #tpu.memory_space<vmem>>) attributes {dimension_semantics = [#tpu.dimension_semantics<parallel>], iteration_bounds = array<i64: 2>, scalar_prefetch = 0 : i64, scratch_operands = 0 : i64, tpu.core_type = #tpu.core_type<tc>, window_params = [{transform_indices = @transform_0, window_bounds = array<i64: 1, 8, 256>}, {pipeline_mode = #tpu.pipeline_mode<synchronous>, transform_indices = @transform_1, window_bounds = array<i64: 8, 72>}, {pipeline_mode = #tpu.pipeline_mode<synchronous>, transform_indices = @transform_2, window_bounds = array<i64: 8, 1>}, {pipeline_mode = #tpu.pipeline_mode<synchronous>, transform_indices = @transform_3, window_bounds = array<i64: 3, 72>}, {pipeline_mode = #tpu.pipeline_mode<synchronous>, transform_indices = @transform_4, window_bounds = array<i64: 3, 1>}, {transform_indices = @transform_5, window_bounds = array<i64: 1, 3, 256>}]} {
    %0 = tpu.iota {dimensions = array<i32: 1>} : vector<1x256xi32>
    %c16_i32 = arith.constant 16 : i32
    %c0_i32 = arith.constant 0 : i32
    %1 = arith.cmpi eq, %c16_i32, %c0_i32 : i32
    %c1_i32 = arith.constant 1 : i32
    %2 = arith.select %1, %c1_i32, %c16_i32 : i32
    %3 = vector.broadcast %2 : i32 to vector<1x256xi32>
    %4 = arith.remsi %0, %3 : vector<1x256xi32>
    %c0_i32_0 = arith.constant 0 : i32
    %5 = vector.broadcast %c0_i32_0 : i32 to vector<1x256xi32>
    %6 = arith.cmpi ne, %4, %5 : vector<1x256xi32>
    %c0_i32_1 = arith.constant 0 : i32
    %7 = vector.broadcast %c0_i32_1 : i32 to vector<1x256xi32>
    %8 = arith.cmpi slt, %4, %7 : vector<1x256xi32>
    %c0_i32_2 = arith.constant 0 : i32
    %9 = arith.cmpi slt, %2, %c0_i32_2 : i32
    %10 = vector.broadcast %9 : i1 to vector<1x256xi1>
    %11 = vector.broadcast %10 : vector<1x256xi1> to vector<1x256xi1>
    %12 = arith.xori %8, %11 : vector<1x256xi1>
    %13 = arith.andi %12, %6 : vector<1x256xi1>
    %14 = vector.broadcast %2 : i32 to vector<1x256xi32>
    %15 = arith.addi %4, %14 : vector<1x256xi32>
    %16 = arith.select %13, %15, %4 : vector<1x256xi1>, vector<1x256xi32>
    %c1_i32_3 = arith.constant 1 : i32
    %17 = vector.broadcast %c1_i32_3 : i32 to vector<1x256xi32>
    %18 = arith.cmpi sge, %16, %17 : vector<1x256xi32>
    %c14_i32 = arith.constant 14 : i32
    %19 = vector.broadcast %c14_i32 : i32 to vector<1x256xi32>
    %20 = arith.cmpi sle, %16, %19 : vector<1x256xi32>
    %c0 = arith.constant 0 : index
    %c0_4 = arith.constant 0 : index
    %c0_5 = arith.constant 0 : index
    %21 = vector.load %arg1[%c0, %c0_4, %c0_5] : memref<1x8x256xf32, #tpu.memory_space<vmem>>, vector<1x8x256xf32>
    %22 = vector.shape_cast %21 : vector<1x8x256xf32> to vector<8x256xf32>
    %cst = arith.constant 0.000000e+00 : f32
    %23 = vector.broadcast %cst : f32 to vector<8x17xf32>
    %24 = tpu.concatenate %23, %22, %23 in 1 : vector<8x17xf32>, vector<8x256xf32>, vector<8x17xf32> -> vector<8x290xf32>
    %25 = vector.extract_strided_slice %24 {offsets = [0, 0], sizes = [8, 256], strides = [1, 1]} : vector<8x290xf32> to vector<8x256xf32>
    %cst_6 = arith.constant 0.000000e+00 : f32
    %26 = vector.shape_cast %18 : vector<1x256xi1> to vector<1x256xi1>
    %27 = vector.broadcast %26 : vector<1x256xi1> to vector<8x256xi1>
    %28 = vector.broadcast %cst_6 : f32 to vector<8x256xf32>
    %29 = arith.select %27, %25, %28 : vector<8x256xi1>, vector<8x256xf32>
    %30 = vector.extract_strided_slice %24 {offsets = [0, 1], sizes = [8, 256], strides = [1, 1]} : vector<8x290xf32> to vector<8x256xf32>
    %31 = vector.extract_strided_slice %24 {offsets = [0, 2], sizes = [8, 256], strides = [1, 1]} : vector<8x290xf32> to vector<8x256xf32>
    %cst_7 = arith.constant 0.000000e+00 : f32
    %32 = vector.shape_cast %20 : vector<1x256xi1> to vector<1x256xi1>
    %33 = vector.broadcast %32 : vector<1x256xi1> to vector<8x256xi1>
    %34 = vector.broadcast %cst_7 : f32 to vector<8x256xf32>
    %35 = arith.select %33, %31, %34 : vector<8x256xi1>, vector<8x256xf32>
    %36 = vector.extract_strided_slice %24 {offsets = [0, 16], sizes = [8, 256], strides = [1, 1]} : vector<8x290xf32> to vector<8x256xf32>
    %cst_8 = arith.constant 0.000000e+00 : f32
    %37 = vector.shape_cast %18 : vector<1x256xi1> to vector<1x256xi1>
    %38 = vector.broadcast %37 : vector<1x256xi1> to vector<8x256xi1>
    %39 = vector.broadcast %cst_8 : f32 to vector<8x256xf32>
    %40 = arith.select %38, %36, %39 : vector<8x256xi1>, vector<8x256xf32>
    %41 = vector.extract_strided_slice %24 {offsets = [0, 17], sizes = [8, 256], strides = [1, 1]} : vector<8x290xf32> to vector<8x256xf32>
    %42 = vector.extract_strided_slice %24 {offsets = [0, 18], sizes = [8, 256], strides = [1, 1]} : vector<8x290xf32> to vector<8x256xf32>
    %cst_9 = arith.constant 0.000000e+00 : f32
    %43 = vector.shape_cast %20 : vector<1x256xi1> to vector<1x256xi1>
    %44 = vector.broadcast %43 : vector<1x256xi1> to vector<8x256xi1>
    %45 = vector.broadcast %cst_9 : f32 to vector<8x256xf32>
    %46 = arith.select %44, %42, %45 : vector<8x256xi1>, vector<8x256xf32>
    %47 = vector.extract_strided_slice %24 {offsets = [0, 32], sizes = [8, 256], strides = [1, 1]} : vector<8x290xf32> to vector<8x256xf32>
    %cst_10 = arith.constant 0.000000e+00 : f32
    %48 = vector.shape_cast %18 : vector<1x256xi1> to vector<1x256xi1>
    %49 = vector.broadcast %48 : vector<1x256xi1> to vector<8x256xi1>
    %50 = vector.broadcast %cst_10 : f32 to vector<8x256xf32>
    %51 = arith.select %49, %47, %50 : vector<8x256xi1>, vector<8x256xf32>
    %52 = vector.extract_strided_slice %24 {offsets = [0, 33], sizes = [8, 256], strides = [1, 1]} : vector<8x290xf32> to vector<8x256xf32>
    %53 = vector.extract_strided_slice %24 {offsets = [0, 34], sizes = [8, 256], strides = [1, 1]} : vector<8x290xf32> to vector<8x256xf32>
    %cst_11 = arith.constant 0.000000e+00 : f32
    %54 = vector.shape_cast %20 : vector<1x256xi1> to vector<1x256xi1>
    %55 = vector.broadcast %54 : vector<1x256xi1> to vector<8x256xi1>
    %56 = vector.broadcast %cst_11 : f32 to vector<8x256xf32>
    %57 = arith.select %55, %53, %56 : vector<8x256xi1>, vector<8x256xf32>
    %58 = tpu.concatenate %29, %30, %35, %40, %41, %46, %51, %52, %57 in 0 : vector<8x256xf32>, vector<8x256xf32>, vector<8x256xf32>, vector<8x256xf32>, vector<8x256xf32>, vector<8x256xf32>, vector<8x256xf32>, vector<8x256xf32>, vector<8x256xf32> -> vector<72x256xf32>
    %c0_12 = arith.constant 0 : index
    %c0_13 = arith.constant 0 : index
    %59 = vector.load %arg2[%c0_12, %c0_13] : memref<8x72xf32, #tpu.memory_space<vmem>>, vector<8x72xf32>
    %cst_14 = arith.constant dense<0.000000e+00> : vector<8x256xf32>
    %60 = tpu.matmul %59, %58, %cst_14 {dimension_numbers = #tpu.dot_dimension_numbers<[1], [0], [0], [1], [0, 0, 1, 1], [], []>} : vector<8x72xf32>, vector<72x256xf32>, vector<8x256xf32> -> vector<8x256xf32>
    %c0_15 = arith.constant 0 : index
    %c0_16 = arith.constant 0 : index
    %61 = vector.load %arg3[%c0_15, %c0_16] : memref<8x1xf32, #tpu.memory_space<vmem>>, vector<8x1xf32>
    %62 = vector.broadcast %61 : vector<8x1xf32> to vector<8x256xf32>
    %63 = arith.addf %60, %62 : vector<8x256xf32>
    %cst_17 = arith.constant 0.000000e+00 : f32
    %64 = vector.broadcast %cst_17 : f32 to vector<8x256xf32>
    %65 = arith.cmpf ogt, %63, %64 : vector<8x256xf32>
    %cst_18 = arith.constant 2.000000e-01 : f32
    %66 = vector.broadcast %cst_18 : f32 to vector<8x256xf32>
    %67 = arith.mulf %66, %63 : vector<8x256xf32>
    %68 = arith.select %65, %63, %67 : vector<8x256xi1>, vector<8x256xf32>
    %cst_19 = arith.constant 0.000000e+00 : f32
    %69 = vector.broadcast %cst_19 : f32 to vector<8x17xf32>
    %70 = tpu.concatenate %69, %68, %69 in 1 : vector<8x17xf32>, vector<8x256xf32>, vector<8x17xf32> -> vector<8x290xf32>
    %71 = vector.extract_strided_slice %70 {offsets = [0, 0], sizes = [8, 256], strides = [1, 1]} : vector<8x290xf32> to vector<8x256xf32>
    %cst_20 = arith.constant 0.000000e+00 : f32
    %72 = vector.shape_cast %18 : vector<1x256xi1> to vector<1x256xi1>
    %73 = vector.broadcast %72 : vector<1x256xi1> to vector<8x256xi1>
    %74 = vector.broadcast %cst_20 : f32 to vector<8x256xf32>
    %75 = arith.select %73, %71, %74 : vector<8x256xi1>, vector<8x256xf32>
    %76 = vector.extract_strided_slice %70 {offsets = [0, 1], sizes = [8, 256], strides = [1, 1]} : vector<8x290xf32> to vector<8x256xf32>
    %77 = vector.extract_strided_slice %70 {offsets = [0, 2], sizes = [8, 256], strides = [1, 1]} : vector<8x290xf32> to vector<8x256xf32>
    %cst_21 = arith.constant 0.000000e+00 : f32
    %78 = vector.shape_cast %20 : vector<1x256xi1> to vector<1x256xi1>
    %79 = vector.broadcast %78 : vector<1x256xi1> to vector<8x256xi1>
    %80 = vector.broadcast %cst_21 : f32 to vector<8x256xf32>
    %81 = arith.select %79, %77, %80 : vector<8x256xi1>, vector<8x256xf32>
    %82 = vector.extract_strided_slice %70 {offsets = [0, 16], sizes = [8, 256], strides = [1, 1]} : vector<8x290xf32> to vector<8x256xf32>
    %cst_22 = arith.constant 0.000000e+00 : f32
    %83 = vector.shape_cast %18 : vector<1x256xi1> to vector<1x256xi1>
    %84 = vector.broadcast %83 : vector<1x256xi1> to vector<8x256xi1>
    %85 = vector.broadcast %cst_22 : f32 to vector<8x256xf32>
    %86 = arith.select %84, %82, %85 : vector<8x256xi1>, vector<8x256xf32>
    %87 = vector.extract_strided_slice %70 {offsets = [0, 17], sizes = [8, 256], strides = [1, 1]} : vector<8x290xf32> to vector<8x256xf32>
    %88 = vector.extract_strided_slice %70 {offsets = [0, 18], sizes = [8, 256], strides = [1, 1]} : vector<8x290xf32> to vector<8x256xf32>
    %cst_23 = arith.constant 0.000000e+00 : f32
    %89 = vector.shape_cast %20 : vector<1x256xi1> to vector<1x256xi1>
    %90 = vector.broadcast %89 : vector<1x256xi1> to vector<8x256xi1>
    %91 = vector.broadcast %cst_23 : f32 to vector<8x256xf32>
    %92 = arith.select %90, %88, %91 : vector<8x256xi1>, vector<8x256xf32>
    %93 = vector.extract_strided_slice %70 {offsets = [0, 32], sizes = [8, 256], strides = [1, 1]} : vector<8x290xf32> to vector<8x256xf32>
    %cst_24 = arith.constant 0.000000e+00 : f32
    %94 = vector.shape_cast %18 : vector<1x256xi1> to vector<1x256xi1>
    %95 = vector.broadcast %94 : vector<1x256xi1> to vector<8x256xi1>
    %96 = vector.broadcast %cst_24 : f32 to vector<8x256xf32>
    %97 = arith.select %95, %93, %96 : vector<8x256xi1>, vector<8x256xf32>
    %98 = vector.extract_strided_slice %70 {offsets = [0, 33], sizes = [8, 256], strides = [1, 1]} : vector<8x290xf32> to vector<8x256xf32>
    %99 = vector.extract_strided_slice %70 {offsets = [0, 34], sizes = [8, 256], strides = [1, 1]} : vector<8x290xf32> to vector<8x256xf32>
    %cst_25 = arith.constant 0.000000e+00 : f32
    %100 = vector.shape_cast %20 : vector<1x256xi1> to vector<1x256xi1>
    %101 = vector.broadcast %100 : vector<1x256xi1> to vector<8x256xi1>
    %102 = vector.broadcast %cst_25 : f32 to vector<8x256xf32>
    %103 = arith.select %101, %99, %102 : vector<8x256xi1>, vector<8x256xf32>
    %104 = tpu.concatenate %75, %76, %81, %86, %87, %92, %97, %98, %103 in 0 : vector<8x256xf32>, vector<8x256xf32>, vector<8x256xf32>, vector<8x256xf32>, vector<8x256xf32>, vector<8x256xf32>, vector<8x256xf32>, vector<8x256xf32>, vector<8x256xf32> -> vector<72x256xf32>
    %c0_26 = arith.constant 0 : index
    %c0_27 = arith.constant 0 : index
    %105 = vector.load %arg4[%c0_26, %c0_27] : memref<3x72xf32, #tpu.memory_space<vmem>>, vector<3x72xf32>
    %cst_28 = arith.constant dense<0.000000e+00> : vector<3x256xf32>
    %106 = tpu.matmul %105, %104, %cst_28 {dimension_numbers = #tpu.dot_dimension_numbers<[1], [0], [0], [1], [0, 0, 1, 1], [], []>} : vector<3x72xf32>, vector<72x256xf32>, vector<3x256xf32> -> vector<3x256xf32>
    %c0_29 = arith.constant 0 : index
    %c0_30 = arith.constant 0 : index
    %107 = vector.load %arg5[%c0_29, %c0_30] : memref<3x1xf32, #tpu.memory_space<vmem>>, vector<3x1xf32>
    %108 = vector.broadcast %107 : vector<3x1xf32> to vector<3x256xf32>
    %109 = arith.addf %106, %108 : vector<3x256xf32>
    %cst_31 = arith.constant 0.000000e+00 : f32
    %110 = vector.broadcast %cst_31 : f32 to vector<3x256xf32>
    %111 = arith.cmpf ogt, %109, %110 : vector<3x256xf32>
    %cst_32 = arith.constant 2.000000e-01 : f32
    %112 = vector.broadcast %cst_32 : f32 to vector<3x256xf32>
    %113 = arith.mulf %112, %109 : vector<3x256xf32>
    %114 = arith.select %111, %109, %113 : vector<3x256xi1>, vector<3x256xf32>
    %c0_33 = arith.constant 0 : index
    %c0_34 = arith.constant 0 : index
    %c0_35 = arith.constant 0 : index
    %115 = vector.load %arg6[%c0_33, %c0_34, %c0_35] : memref<1x3x256xf32, #tpu.memory_space<vmem>>, vector<1x3x256xf32>
    %116 = vector.shape_cast %115 : vector<1x3x256xf32> to vector<3x256xf32>
    %117 = vector.shape_cast %114 : vector<3x256xf32> to vector<1x3x256xf32>
    tpu.vector_store %arg6[%c0_33, %c0_34, %c0_35], %117 {strides = array<i32>} : memref<1x3x256xf32, #tpu.memory_space<vmem>>, vector<1x3x256xf32>,
    return
  }
  func.func @transform_0(%arg0: i32) -> (i32, i32, i32) {
    %c0_i32 = arith.constant 0 : i32
    %c0_i32_0 = arith.constant 0 : i32
    %c0_i32_1 = arith.constant 0 : i32
    return %arg0, %c0_i32, %c0_i32_0 : i32, i32, i32
  }
  func.func @transform_1(%arg0: i32) -> (i32, i32) {
    %c0_i32 = arith.constant 0 : i32
    %c0_i32_0 = arith.constant 0 : i32
    %c0_i32_1 = arith.constant 0 : i32
    return %c0_i32, %c0_i32_0 : i32, i32
  }
  func.func @transform_2(%arg0: i32) -> (i32, i32) {
    %c0_i32 = arith.constant 0 : i32
    %c0_i32_0 = arith.constant 0 : i32
    %c0_i32_1 = arith.constant 0 : i32
    return %c0_i32, %c0_i32_0 : i32, i32
  }
  func.func @transform_3(%arg0: i32) -> (i32, i32) {
    %c0_i32 = arith.constant 0 : i32
    %c0_i32_0 = arith.constant 0 : i32
    %c0_i32_1 = arith.constant 0 : i32
    return %c0_i32, %c0_i32_0 : i32, i32
  }
  func.func @transform_4(%arg0: i32) -> (i32, i32) {
    %c0_i32 = arith.constant 0 : i32
    %c0_i32_0 = arith.constant 0 : i32
    %c0_i32_1 = arith.constant 0 : i32
    return %c0_i32, %c0_i32_0 : i32, i32
  }
  func.func @transform_5(%arg0: i32) -> (i32, i32, i32) {
    %c0_i32 = arith.constant 0 : i32
    %c0_i32_0 = arith.constant 0 : i32
    %c0_i32_1 = arith.constant 0 : i32
    return %arg0, %c0_i32, %c0_i32_0 : i32, i32, i32
  }
}

</mosaic_0001>

<bundles_post_ra>
// kernel: pred_head_forward.1
= control target key start
LH: loop header
LB: loop body
LE: loop exit
PB: predicated region body
PF: predicated region fallthrough
CT: control target
= control target key end

     0   :  { %s951_s18 = smov 0   ;;  %s1166_s0 = inlined_call_operand.vmem [shape: f32[2,8,256], index: 0, kind: input, shape index: {}]   ;;  %s1167_s1 = inlined_call_operand.vmem [shape: f32[8,72], index: 1, kind: input, shape index: {}]   ;;  %s1168_s2 = inlined_call_operand.vmem [shape: f32[8,1], index: 2, kind: input, shape index: {}]   ;;  %s1169_s3 = inlined_call_operand.vmem [shape: f32[3,72], index: 3, kind: input, shape index: {}]   ;;  %s1170_s4 = inlined_call_operand.vmem [shape: f32[3,1], index: 4, kind: input, shape index: {}]   ;;  %s1171_s5 = inlined_call_operand.vmem [shape: f32[2,3,256], index: 5, kind: output, shape index: {}]  }
   0x1 LB: > { %s722_s19 = sadd.s32 4294967295, %s907_s18   ;;  %p726_p0 = scmp.ge.s32.totalorder %s907_s18, 1  ;;  %s907_s18 = sphi %s951_s18, %s15_s18  }
   0x2   : > { %p187_p1 = scmp.lt.s32.totalorder %s907_s18, 3 }
   0x4   : > { %p188_p2 = pnand %p726_p0, %p187_p1 }
   0x5   : > { %p215_p3 = scmp.lt.s32.totalorder (!%p188_p2), %s722_s19, 1  ;;  %s909_s24 = smov (!%p188_p2), 17   ;;  %vm264_vm0 = vcmask (!%p188_p2), 138240   ;;  %v916_v8 = vmov (!%p188_p2), 0.0   ;;  %v919_v9 = vmov (!%p188_p2), 0   ;;  %v382_v10 = vld [vmem:[%s1168_s2] sm:$0xff] (!%p188_p2)  ;;  %v225_v11 = vlaneseq (!%p188_p2) }
   0x6   : > { %191 = sbr.rel (%p188_p2) target bundleno = 994 (0x3e2), region = 40  ;;  %s910_s25 = smov (!%p188_p2), 126   ;;  %456 = vmatprep.mubr.f32.mxu0 (!%p188_p2), %v916_v8  ;;  %649 = vmatprep.mubr.f32.mxu1 (!%p188_p2), %v916_v8  ;;  %vm354_vm1 = vcmask (!%p188_p2), 1039360   ;;  %vm920_vm4 = vmmov (!%p188_p2), 1   ;;  %vm289_vm7 = vcmask (!%p188_p2), 1031168   ;;  %vm302_vm8 = vcmask (!%p188_p2), 916480  }
   0x7   : > { %s911_s26 = smov (!%p188_p2), 127   ;;  %s912_s27 = smov (!%p188_p2), 110   ;;  %864 = vset.pattern.permute.xlu1 (!%p188_p2), %v919_v9  ;;  %900 = vset.pattern.permute.xlu0 (!%p188_p2), %v919_v9  ;;  %v226_v12 = vand.u32 (!%p188_p2), 127, %v225_v11  ;;  %vm1174_vm13 = vcmask (!%p188_p2), 900096   ;;  %vm1177_vm14 = vcmask (!%p188_p2), 908288  }
   0x8   : > { %s913_s28 = smov (!%p188_p2), 112   ;;  %s914_s29 = smov (!%p188_p2), 96  }
   0x9   : > { %s915_s30 = smov (!%p188_p2), 111   ;;  %s917_s6 = smov (!%p188_p2), 94   ;;  %v227_v13 = vadd.s32 (!%p188_p2), 128, %v226_v12  ;;  %v232_v15 = vand.u32 (!%p188_p2), 15, %v226_v12 }
   0xa   : > { %s918_s7 = smov (!%p188_p2), 95  }
   0xb   : > { %v239_v14 = vand.u32 (!%p188_p2), 15, %v227_v13  ;;  %vm994_vm3 = vcmp.ge.s32.totalorder (!%p188_p2), %v232_v15, 1  ;;  %vm1022_vm10 = vcmp.le.s32.totalorder (!%p188_p2), %v232_v15, 14 }
   0xc   : > { %vm1010_vm6 = vmpackc.low (!%p188_p2), %vm920_vm4, %vm994_vm3 }
   0xd   : > { %s1205_s19 = smov (!%p215_p3, %s722_s19), 1  ;;  %vm990_vm2 = vcmp.ge.s32.totalorder %v239_v14, 1  ;;  %vm1018_vm9 = vcmp.le.s32.totalorder %v239_v14, 14  ;;  %vm1172_vm12 = vmpackc.low %vm994_vm3, %vm1022_vm10  ;;  %v381_v14 = vld [vmem:[%s1167_s1] sm:$0xff] }
   0xe   : > { %s759_s20 = sshll.u32 %s1205_s19, 4  ;;  %vm1002_vm5 = vmpackc.low %vm920_vm4, %vm990_vm2  ;;  %s760_s16 = sshll.u32 %s1205_s19, 3 }
   0xf   : > { %s219_s23 = scalar_lea.vmem %s1166_s0, %s759_s20  ;;  %vm1173_vm11 = vmpackc.low %vm990_vm2, %vm1018_vm9  ;;  %s224_s21 = scalar_lea.vmem %s1171_s5, %s760_s16 }
  0x10   : > { %v256_v0 = vld [vmem:[%s219_s23] sm:$0xff]  ;;  %v257_v1 = vld [vmem:[%s219_s23 + $0x8] sm:$0xff]  ;;  %vm1053_vm15 = vmpackc.low %vm1018_vm9, %vm920_vm4 }
  0x11   : > { %260 = vrot.lane.b32.xlu0 %v256_v0, %s909_s24 }
  0x15   : > { %262 = vrot.lane.b32.xlu0 %v257_v1, %s909_s24 }
  0x83   : > { %v261_v2 = vpop.permute.xlu0 %260 }
  0x84   : > { %v269_v7 = vsel %vm264_vm0, 0.0, %v261_v2 }
  0x87   : > { %v263_v3 = vpop.permute.xlu0 %262 }
  0x88   : > { %v265_v4 = vsel %vm264_vm0, %v261_v2, %v263_v3  ;;  %v270_v5 = vsel %vm264_vm0, %v263_v3, 0.0 }
  0x89   : > { %v834_v6 = vpack.i.bf16 %v270_v5, %v265_v4 }
  0x8b   : > { %835 = vrot.lane.b32.xlu0 %v834_v6, %s910_s25  ;;  %830 = vrot.lane.b32.xlu1 %v834_v6, %s911_s26 }
  0x8f   : > { %283 = vrot.lane.b32.xlu0 %v269_v7, %s910_s25  ;;  %348 = vrot.lane.b32.xlu1 %v269_v7, %s911_s26 }
  0x93   : > { %845 = vrot.lane.b32.xlu0 %v834_v6, %s912_s27  ;;  %840 = vrot.lane.b32.xlu1 %v834_v6, %s913_s28 }
  0x97   : > { %309 = vrot.lane.b32.xlu0 %v269_v7, %s912_s27  ;;  %296 = vrot.lane.b32.xlu1 %v269_v7, %s913_s28 }
  0x9b   : > { %855 = vrot.lane.b32.xlu0 %v834_v6, %s914_s29  ;;  %850 = vrot.lane.b32.xlu1 %v834_v6, %s915_s30 }
  0x9f   : > { %322 = vrot.lane.b32.xlu0 %v269_v7, %s914_s29  ;;  %359 = vrot.lane.b32.xlu1 %v269_v7, %s915_s30 }
  0xa3   : > { %337 = vrot.lane.b32.xlu0 %v265_v4, %s917_s6  ;;  %860 = vrot.lane.b32.xlu1 %v834_v6, %s918_s7 }
  0xa7   : > { %335 = vrot.lane.b32.xlu0 %v269_v7, %s917_s6  ;;  %370 = vrot.lane.b32.xlu1 %v269_v7, %s918_s7 }
  0xab   : > { %339 = vrot.lane.b32.xlu1 %v270_v5, %s917_s6 }
  0xaf   : > { %385 = vperm.xlu1 %864, %v382_v10  }
  0xfd   : > { %v836_v16 = vpop.permute.xlu0 %835  ;;  %v831_v17 = vpop.permute.xlu1 %830 }
  0xfe   : > { %v833_v19 = vunpack.i.h.bf16 %v831_v17  ;;  %v832_v20 = vunpack.i.l.bf16 %v831_v17  ;;  %v838_v30 = vunpack.i.h.bf16 %v836_v16  ;;  %v837_v31 = vunpack.i.l.bf16 %v836_v16 }
 0x100   : > { %v356_v22 = vsel %vm354_vm1, %v832_v20, %v833_v19  ;;  %v291_v38 = vsel %vm289_vm7, %v837_v31, %v838_v30 }
 0x101   : > { %v284_v24 = vpop.permute.xlu0 %283  ;;  %v349_v25 = vpop.permute.xlu1 %348  ;;  %v761_v26 = vpack.c.bf16 %v356_v22, %v265_v4 }
 0x102   : > { %v355_v27 = vsel %vm354_vm1, %v349_v25, %v832_v20  ;;  %v290_v43 = vsel %vm289_vm7, %v284_v24, %v837_v31 }
 0x103   : > { %v764_v29 = vpack.c.bf16 %v355_v27, %v269_v7  ;;  %763 = vmatprep.subr.msk.bf16.mxu0 %vm1002_vm5, %v761_v26 }
 0x105   : > { %v846_v32 = vpop.permute.xlu0 %845  ;;  %v841_v33 = vpop.permute.xlu1 %840  ;;  %766 = vmatpush1.bf16.msk.msra.mxu0 %vm1010_vm6, %v764_v29 }
 0x106   : > { %v843_v35 = vunpack.i.h.bf16 %v841_v33  ;;  %v842_v36 = vunpack.i.l.bf16 %v841_v33  ;;  %v848_v46 = vunpack.i.h.bf16 %v846_v32  ;;  %v847_v47 = vunpack.i.l.bf16 %v846_v32 }
 0x108   : > { %v304_v39 = vsel %vm302_vm8, %v842_v36, %v843_v35  ;;  %v317_v52 = vsel %vm1174_vm13, %v847_v47, %v848_v46 }
 0x109   : > { %v310_v40 = vpop.permute.xlu0 %309  ;;  %v297_v41 = vpop.permute.xlu1 %296  ;;  %v767_v42 = vpack.c.bf16 %v304_v39, %v291_v38 }
 0x10a   : > { %v303_v44 = vsel %vm302_vm8, %v297_v41, %v842_v36  ;;  %v316_v58 = vsel %vm1174_vm13, %v310_v40, %v847_v47  ;;  %vm1176_vm13 = vcmask 777216   ;;  %v576_v36 = vld [vmem:[%s1170_s4] sm:$0x7] }
 0x10b   : > { %v770_v45 = vpack.c.bf16 %v303_v44, %v290_v43  ;;  %769 = vmatprep.subr.msk.bf16.mxu0 %vm1173_vm11, %v767_v42  ;;  %vm1175_vm11 = vcmask 785408  }
 0x10d   : > { %v856_v48 = vpop.permute.xlu0 %855  ;;  %v851_v49 = vpop.permute.xlu1 %850  ;;  %772 = vmatpush1.bf16.msk.msra.mxu0 %vm1172_vm12, %v770_v45  ;;  %vm1062_vm12 = vmpackc.low %vm1022_vm10, %vm920_vm4  ;;  %vm341_vm4 = vcmask 769024  }
 0x10e   : > { %v853_v50 = vunpack.i.h.bf16 %v851_v49  ;;  %v852_v51 = vunpack.i.l.bf16 %v851_v49  ;;  %v858_v62 = vunpack.i.h.bf16 %v856_v48  ;;  %v857_v63 = vunpack.i.l.bf16 %v856_v48 }
 0x110   : > { %v367_v53 = vsel %vm1177_vm14, %v852_v51, %v853_v50  ;;  %v330_v4 = vsel %vm1175_vm11, %v857_v63, %v858_v62 }
 0x111   : > { %v323_v55 = vpop.permute.xlu0 %322  ;;  %v360_v56 = vpop.permute.xlu1 %359  ;;  %v773_v57 = vpack.c.bf16 %v317_v52, %v367_v53 }
 0x112   : > { %v366_v59 = vsel %vm1177_vm14, %v360_v56, %v852_v51  ;;  %v329_v8 = vsel %vm1175_vm11, %v323_v55, %v857_v63  ;;  %vm388_vm11 = vcmask 588800  }
 0x113   : > { %v776_v61 = vpack.c.bf16 %v316_v58, %v366_v59  ;;  %775 = vmatprep.subr.msk.bf16.mxu0 %vm1053_vm15, %v773_v57 }
 0x115   : > { %v861_v0 = vpop.permute.xlu1 %860  ;;  %778 = vmatpush1.bf16.msk.msra.mxu0 %vm1062_vm12, %v776_v61  ;;  %v338_v3 = vpop.permute.xlu0 %337 }
 0x116   : > { %v863_v1 = vunpack.i.h.bf16 %v861_v0  ;;  %v862_v2 = vunpack.i.l.bf16 %v861_v0 }
 0x118   : > { %v378_v5 = vsel %vm1176_vm13, %v862_v2, %v863_v1 }
 0x119   : > { %v371_v6 = vpop.permute.xlu1 %370  ;;  %v779_v7 = vpack.c.bf16 %v378_v5, %v330_v4  ;;  %v336_v11 = vpop.permute.xlu0 %335 }
 0x11a   : > { %v377_v9 = vsel %vm1176_vm13, %v371_v6, %v862_v2  ;;  %v342_v15 = vsel %vm341_vm4, %v336_v11, %v338_v3 }
 0x11b   : > { %v782_v10 = vpack.c.bf16 %v377_v9, %v329_v8  ;;  %781 = vmatprep.subr.msk.bf16.mxu0 %vm1002_vm5, %v779_v7 }
 0x11d   : > { %v340_v12 = vpop.permute.xlu1 %339  ;;  %784 = vmatpush1.bf16.msk.msra.mxu0 %vm1010_vm6, %v782_v10 }
 0x11e   : > { %v343_v13 = vsel %vm341_vm4, %v338_v3, %v340_v12 }
 0x11f   : > { %741 = vmatprep.subr.msk.mxu0 %vm1018_vm9, %v343_v13 }
 0x121   : > { %742 = vmatpush1.msk.msra.mxu0 %vm1022_vm10, %v342_v15 }
 0x122   : > { %743 = vmatmul.mubr.msk.f32.vlgmr.msra.gmra.mrb[0].mxu0 %vm388_vm11, %v381_v14 }
 0x12e   : > { %v386_v16 = vpop.permute.xlu1 %385 }
 0x1f5   : > { %v458_v17 = vpop.f32.mrb[0].mxu0 }
 0x1f6   : > { %v459_v19 = vadd.f32 %v458_v17, %v386_v16  ;;  %v460_v20 = vpop.f32.mrb[1].mxu0 }
 0x1f7   : > { %v461_v22 = vadd.f32 %v460_v20, %v386_v16 }
 0x1f8   : > { %v465_v24 = vmul.f32 0.2, %v459_v19  ;;  %vm463_vm13 = vcmp.gt.f32.partialorder %v459_v19, 0.0 }
 0x1f9   : > { %v466_v25 = vmul.f32 0.2, %v461_v22  ;;  %vm464_vm14 = vcmp.gt.f32.partialorder %v461_v22, 0.0 }
 0x1fa   : > { %v467_v26 = vsel %vm463_vm13, %v459_v19, %v465_v24 }
 0x1fb   : > { %471 = vrot.lane.b32.xlu0 %v467_v26, %s909_s24  ;;  %v468_v27 = vsel %vm464_vm14, %v461_v22, %v466_v25  ;;  %vm1199_vm14 = vmpackc.low %vm994_vm3, %vm1022_vm10 }
 0x1fc   : > { %473 = vrot.lane.b32.xlu1 %v468_v27, %s909_s24 }
 0x26d   : > { %v472_v29 = vpop.permute.xlu0 %471 }
 0x26e   : > { %v479_v30 = vsel %vm264_vm0, 0.0, %v472_v29  ;;  %v474_v31 = vpop.permute.xlu1 %473 }
 0x26f   : > { %485 = vrot.lane.b32.xlu0 %v479_v30, %s910_s25  ;;  %545 = vrot.lane.b32.xlu1 %v479_v30, %s911_s26  ;;  %v475_v32 = vsel %vm264_vm0, %v472_v29, %v474_v31  ;;  %v480_v33 = vsel %vm264_vm0, %v474_v31, 0.0  ;;  %vm1194_vm0 = vcmask 908288   ;;  %v575_v31 = vld [vmem:[%s1169_s3] sm:$0x7] }
 0x270   : > { %v875_v35 = vpack.i.bf16 %v480_v33, %v475_v32 }
 0x273   : > { %509 = vrot.lane.b32.xlu0 %v479_v30, %s912_s27  ;;  %497 = vrot.lane.b32.xlu1 %v479_v30, %s913_s28 }
 0x277   : > { %521 = vrot.lane.b32.xlu0 %v479_v30, %s914_s29  ;;  %555 = vrot.lane.b32.xlu1 %v479_v30, %s915_s30 }
 0x27b   : > { %876 = vrot.lane.b32.xlu1 %v875_v35, %s913_s28  ;;  %866 = vrot.lane.b32.xlu0 %v875_v35, %s911_s26 }
 0x27f   : > { %886 = vrot.lane.b32.xlu1 %v875_v35, %s915_s30  ;;  %871 = vrot.lane.b32.xlu0 %v875_v35, %s910_s25 }
 0x283   : > { %896 = vrot.lane.b32.xlu1 %v875_v35, %s918_s7  ;;  %881 = vrot.lane.b32.xlu0 %v875_v35, %s912_s27 }
 0x287   : > { %565 = vrot.lane.b32.xlu1 %v479_v30, %s918_s7  ;;  %891 = vrot.lane.b32.xlu0 %v875_v35, %s914_s29 }
 0x28b   : > { %537 = vrot.lane.b32.xlu1 %v480_v33, %s917_s6  ;;  %535 = vrot.lane.b32.xlu0 %v475_v32, %s917_s6 }
 0x28f   : > { %579 = vperm.xlu1 %864, %v576_v36   ;;  %533 = vrot.lane.b32.xlu0 %v479_v30, %s917_s6 }
 0x2e1   : > { %v486_v38 = vpop.permute.xlu0 %485  ;;  %v546_v39 = vpop.permute.xlu1 %545 }
 0x2e5   : > { %v510_v40 = vpop.permute.xlu0 %509  ;;  %v498_v41 = vpop.permute.xlu1 %497 }
 0x2e9   : > { %v522_v42 = vpop.permute.xlu0 %521  ;;  %v556_v43 = vpop.permute.xlu1 %555 }
 0x2ed   : > { %v877_v44 = vpop.permute.xlu1 %876  ;;  %v867_v45 = vpop.permute.xlu0 %866 }
 0x2ee   : > { %v869_v46 = vunpack.i.h.bf16 %v867_v45  ;;  %v868_v47 = vunpack.i.l.bf16 %v867_v45  ;;  %v879_v48 = vunpack.i.h.bf16 %v877_v44  ;;  %v878_v49 = vunpack.i.l.bf16 %v877_v44 }
 0x2f0   : > { %v552_v50 = vsel %vm354_vm1, %v868_v47, %v869_v46  ;;  %v551_v51 = vsel %vm354_vm1, %v546_v39, %v868_v47  ;;  %v503_v62 = vsel %vm302_vm8, %v498_v41, %v878_v49  ;;  %v504_v63 = vsel %vm302_vm8, %v878_v49, %v879_v48  ;;  %vm1195_vm1 = vmmov %vm1194_vm0 }
 0x2f1   : > { %v887_v52 = vpop.permute.xlu1 %886  ;;  %v872_v53 = vpop.permute.xlu0 %871  ;;  %v785_v55 = vpack.c.bf16 %v552_v50, %v475_v32  ;;  %v788_v56 = vpack.c.bf16 %v551_v51, %v479_v30  ;;  %vm1196_vm8 = vmpackc.low %vm990_vm2, %vm1018_vm9  ;;  %vm1200_vm2 = vcmask 777216  }
 0x2f2   : > { %v874_v57 = vunpack.i.h.bf16 %v872_v53  ;;  %v873_v58 = vunpack.i.l.bf16 %v872_v53  ;;  %v889_v59 = vunpack.i.h.bf16 %v887_v52  ;;  %v888_v61 = vunpack.i.l.bf16 %v887_v52 }
 0x2f3   : > { %787 = vmatprep.subr.msk.bf16.mxu1 %vm1002_vm5, %v785_v55 }
 0x2f4   : > { %v491_v0 = vsel %vm289_vm7, %v486_v38, %v873_v58  ;;  %v492_v1 = vsel %vm289_vm7, %v873_v58, %v874_v57  ;;  %790 = vmatpush1.bf16.msk.msra.mxu1 %vm1010_vm6, %v788_v56  ;;  %v561_v8 = vsel %vm1194_vm0, %v556_v43, %v888_v61  ;;  %v562_v9 = vsel %vm1195_vm1, %v888_v61, %v889_v59  ;;  %vm1201_vm0 = vmmov %vm1200_vm2 }
 0x2f5   : > { %v791_v2 = vpack.c.bf16 %v504_v63, %v492_v1  ;;  %v794_v3 = vpack.c.bf16 %v503_v62, %v491_v0  ;;  %v897_v4 = vpop.permute.xlu1 %896  ;;  %v882_v5 = vpop.permute.xlu0 %881  ;;  %vm1197_vm7 = vcmask 900096   ;;  %vm1202_vm1 = vcmask 785408  }
 0x2f6   : > { %v884_v6 = vunpack.i.h.bf16 %v882_v5  ;;  %v883_v7 = vunpack.i.l.bf16 %v882_v5  ;;  %v899_v10 = vunpack.i.h.bf16 %v897_v4  ;;  %v898_v11 = vunpack.i.l.bf16 %v897_v4  ;;  %vm1198_vm13 = vmmov %vm1197_vm7 }
 0x2f7   : > { %793 = vmatprep.subr.msk.bf16.mxu1 %vm1196_vm8, %v791_v2  ;;  %vm1203_vm8 = vmmov %vm1202_vm1 }
 0x2f8   : > { %v515_v12 = vsel %vm1197_vm7, %v510_v40, %v883_v7  ;;  %v516_v13 = vsel %vm1198_vm13, %v883_v7, %v884_v6  ;;  %796 = vmatpush1.bf16.msk.msra.mxu1 %vm1199_vm14, %v794_v3  ;;  %v572_v20 = vsel %vm1200_vm2, %v898_v11, %v899_v10 }
 0x2f9   : > { %v797_v14 = vpack.c.bf16 %v516_v13, %v562_v9  ;;  %v800_v15 = vpack.c.bf16 %v515_v12, %v561_v8  ;;  %v566_v16 = vpop.permute.xlu1 %565  ;;  %v892_v18 = vpop.permute.xlu0 %891 }
 0x2fa   : > { %v894_v17 = vunpack.i.h.bf16 %v892_v18  ;;  %v893_v19 = vunpack.i.l.bf16 %v892_v18  ;;  %v571_v22 = vsel %vm1201_vm0, %v566_v16, %v898_v11 }
 0x2fb   : > { %799 = vmatprep.subr.msk.bf16.mxu1 %vm1053_vm15, %v797_v14 }
 0x2fc   : > { %v527_v24 = vsel %vm1202_vm1, %v522_v42, %v893_v19  ;;  %v528_v21 = vsel %vm1203_vm8, %v893_v19, %v894_v17  ;;  %802 = vmatpush1.bf16.msk.msra.mxu1 %vm1062_vm12, %v800_v15 }
 0x2fd   : > { %v803_v25 = vpack.c.bf16 %v572_v20, %v528_v21  ;;  %v806_v26 = vpack.c.bf16 %v571_v22, %v527_v24  ;;  %v538_v27 = vpop.permute.xlu1 %537  ;;  %v536_v29 = vpop.permute.xlu0 %535 }
 0x2fe   : > { %v540_v54 = vsel %vm341_vm4, %v536_v29, %v538_v27 }
 0x2ff   : > { %805 = vmatprep.subr.msk.bf16.mxu1 %vm1002_vm5, %v803_v25 }
 0x300   : > { %808 = vmatpush1.bf16.msk.msra.mxu1 %vm1010_vm6, %v806_v26 }
 0x301   : > { %v534_v30 = vpop.permute.xlu0 %533  ;;  %754 = vmatprep.subr.msk.mxu1 %vm1018_vm9, %v540_v54 }
 0x302   : > { %v539_v60 = vsel %vm341_vm4, %v534_v30, %v536_v29 }
 0x304   : > { %755 = vmatpush1.msk.msra.mxu1 %vm1022_vm10, %v539_v60 }
 0x305   : > { %756 = vmatmul.mubr.msk.f32.vlgmr.msra.gmra.mrb[0].mxu1 %vm388_vm11, %v575_v31 }
 0x30e   : > { %v580_v23 = vpop.permute.xlu1 %579 }
 0x3d8   : > { %v651_v32 = vpop.f32.mrb[0].mxu1 }
 0x3d9   : > { %v652_v33 = vadd.f32 %v651_v32, %v580_v23  ;;  %v653_v28 = vpop.f32.mrb[1].mxu1 }
 0x3da   : > { %v654_v35 = vadd.f32 %v653_v28, %v580_v23 }
 0x3db   : > { %vm656_vm3 = vcmp.gt.f32.partialorder %v652_v33, 0.0  ;;  %v658_v34 = vmul.f32 0.2, %v652_v33 }
 0x3dc   : > { %vm657_vm5 = vcmp.gt.f32.partialorder %v654_v35, 0.0  ;;  %v659_v36 = vmul.f32 0.2, %v654_v35 }
 0x3dd   : > { %v660_v38 = vsel %vm656_vm3, %v652_v33, %v658_v34 }
 0x3de   : > { %v661_v39 = vsel %vm657_vm5, %v654_v35, %v659_v36 }
 0x3df   : > { %v664_v37 = vcombine.low %v660_v38, %v661_v39 }
 0x3e1   : > { %666 = vst [vmem:[%s224_s21] sm:$0x77] %v664_v37 }
 0x3e2 PF: > { %s15_s18 = sadd.s32 1, %s907_s18  }
 0x3e3   : > { %p12_p4 = scmp.ge.s32.totalorder %s15_s18, 4  }
 0x3e5   :  { %14 = sbr.rel (!%p12_p4) target bundleno = 1 (0x1), region = 70 }

</bundles_post_ra>
